<compile_context>
chip_gen: v7x
topology: tpu7x:2x2x1
jax: 0.10.0
libtpu: 0.0.40
codegen_flags: <defaults>
</compile_context>

<pallas_src>
import jax
import jax.numpy as jnp
from jax.experimental import pallas as pl
from jax.experimental.pallas import tpu as pltpu

LANES = 128
TARGET_BLOCK_BYTES = 2 * 1024 * 1024   # per-input, per-step block size in bytes
VMEM_LIMIT_BYTES = 32 * 1024 * 1024    # explicit scoped-VMEM cap (safe on v5e/v6e/v7x)


def _cdiv(a, b):
    return -(-a // b)


def _detect_num_tensorcores():
    """Best-effort TensorCores-per-chip (2 on v7x, 1 on v5e/v6e). Falls back to 1."""
    try:
        info = pltpu.get_tpu_info()
    except Exception:
        return 1
    for attr in ("num_cores", "num_tensorcores", "tensor_cores_per_chip",
                 "cores_per_chip", "core_count"):
        v = getattr(info, attr, None)
        try:
            v = int(v)
        except (TypeError, ValueError):
            continue
        if v >= 1:
            return v
    return 1


def _bit_loss_kernel(x_ref, y_ref, o_ref, acc_ref):
    """Streaming BCE-with-logits partial sums.

    Grid = (split, block).  acc_ref is a single (8, LANES) vreg accumulator,
    re-initialized at block==0 of every split; on the last block it is written
    to the split's lane-dense (1, 8, LANES) output block.
    """
    j = pl.program_id(1)

    @pl.when(j == 0)
    def _init():
        acc_ref[...] = jnp.zeros_like(acc_ref)

    # Stream native dtype from HBM; upcast in-register.
    x = x_ref[...].astype(jnp.float32)
    y = y_ref[...].astype(jnp.float32)

    # Numerically-stable BCE with logits: max(x,0) - x*y + log1p(exp(-|x|))
    loss = jnp.maximum(x, 0.0) - x * y + jnp.log1p(jnp.exp(-jnp.abs(x)))

    # Fold block_rows -> 8 sublanes with leading-axis adds (layout-preserving
    # re-view into (block_rows//8, 8, LANES)); keeps the accumulator at 1 vreg.
    acc_ref[...] += jnp.sum(loss.reshape(-1, 8, LANES), axis=0)

    @pl.when(j == pl.num_programs(1) - 1)
    def _finalize():
        o_ref[...] = acc_ref[...][None]        # (1, 8, LANES), lane-dense


def _bce_sum_plain(xf, yf):
    """Plain-JAX BCE-with-logits sum for tiny ragged remainders."""
    x = xf.astype(jnp.float32)
    y = yf.astype(jnp.float32)
    return jnp.sum(jnp.maximum(x, 0.0) - x * y + jnp.log1p(jnp.exp(-jnp.abs(x))))


def fum_disc_graph_forward(x, groundtruth, lam_acc, tag=None):
    """FUM_Disc_Graph.forward: identity nodes -> Loss.bit(x, groundtruth, λacc)."""
    del tag  # metadata only

    # nodes = nn.Sequential(*[])  ->  identity
    logits = x
    if groundtruth.dtype == jnp.bool_:
        groundtruth = groundtruth.astype(logits.dtype)

    xf = logits.reshape(-1)
    yf = groundtruth.reshape(-1)
    n = xf.shape[0]

    itemsize = max(xf.dtype.itemsize, yf.dtype.itemsize)
    rows_full = n // LANES

    # ---- tiling: keep bytes-per-step roughly constant across dtypes ----
    target_rows = max(8, (TARGET_BLOCK_BYTES // (LANES * itemsize)) // 8 * 8)
    nsplit = _detect_num_tensorcores()

    block_rows = 0
    blocks = 0
    if rows_full >= 8:
        nblocks_wanted = max(1, _cdiv(rows_full, target_rows))
        block_rows = min(target_rows,
                         max(8, (rows_full // nblocks_wanted) // 8 * 8))
        blocks = rows_full // block_rows

    if nsplit > 1:
        if blocks >= nsplit:
            blocks = (blocks // nsplit) * nsplit   # even split across cores
        else:
            nsplit = 1

    kernel_rows = blocks * block_rows
    kernel_elems = kernel_rows * LANES

    # ---- bulk of the reduction: Pallas streaming kernel over exact blocks ----
    if blocks > 0:
        if n % LANES == 0:
            # Free contiguous re-view; no HBM copy.
            X2 = xf.reshape(rows_full, LANES)
            Y2 = yf.reshape(rows_full, LANES)
        else:
            # Misaligned total size: one prefix-slice copy is unavoidable
            # without re-introducing in-kernel masking; tail handled below.
            X2 = xf[:kernel_elems].reshape(kernel_rows, LANES)
            Y2 = yf[:kernel_elems].reshape(kernel_rows, LANES)

        blocks_per_split = blocks // nsplit
        lead_sem = pltpu.CORE_PARALLEL if nsplit > 1 else pltpu.ARBITRARY

        partials = pl.pallas_call(
            _bit_loss_kernel,
            out_shape=jax.ShapeDtypeStruct((nsplit, 8, LANES), jnp.float32),
            grid_spec=pltpu.PrefetchScalarGridSpec(
                num_scalar_prefetch=0,
                grid=(nsplit, blocks_per_split),
                in_specs=[
                    pl.BlockSpec((block_rows, LANES),
                                 lambda i, j: (i * blocks_per_split + j, 0)),
                    pl.BlockSpec((block_rows, LANES),
                                 lambda i, j: (i * blocks_per_split + j, 0)),
                ],
                out_specs=pl.BlockSpec((1, 8, LANES), lambda i, j: (i, 0, 0)),
                scratch_shapes=[pltpu.VMEM((8, LANES), jnp.float32)],
            ),
            compiler_params=pltpu.CompilerParams(
                dimension_semantics=(lead_sem, pltpu.ARBITRARY),
                vmem_limit_bytes=VMEM_LIMIT_BYTES,
            ),
        )(X2, Y2)

        kernel_sum = jnp.sum(partials)
    else:
        kernel_sum = jnp.float32(0.0)

    # ---- ragged remainder (< one block per split + sub-128 tail): plain JAX ----
    if kernel_elems < n:
        tail_sum = _bce_sum_plain(xf[kernel_elems:], yf[kernel_elems:])
    else:
        tail_sum = jnp.float32(0.0)

    total = kernel_sum + tail_sum
    # mean over all elements, scaled by λacc (done in the wrapper, not in-kernel)
    return (jnp.float32(lam_acc) * total / jnp.float32(n)).astype(jnp.float32)


def _reference(x, groundtruth, lam_acc):
    xf = x.reshape(-1).astype(jnp.float32)
    yf = groundtruth.reshape(-1).astype(jnp.float32)
    loss = jnp.maximum(xf, 0.0) - xf * yf + jnp.log1p(jnp.exp(-jnp.abs(xf)))
    return lam_acc * jnp.mean(loss)


if __name__ == "__main__":
    key = jax.random.PRNGKey(0)
    kx, ky = jax.random.split(key)

    B, C, H, W = 2, 4, 16, 16  # NCHW, small shapes
    x = jax.random.normal(kx, (B, C, H, W), dtype=jnp.float32)              # logits
    groundtruth = jax.random.bernoulli(ky, 0.5, (B, C, H, W)).astype(jnp.float32)
    lam_acc = 1.0
    tag = "disc"

    loss = fum_disc_graph_forward(x, groundtruth, lam_acc, tag)
    loss = jax.block_until_ready(loss)

    ref = _reference(x, groundtruth, lam_acc)
    assert jnp.allclose(loss, ref, rtol=1e-5, atol=1e-5), (loss, ref)

    print("KERNEL_OK")
</pallas_src>

<mosaic_0001>
module attributes {stable_mosaic.version = 11 : i64} {
  func.func @_bit_loss_kernel(%arg0: i32, %arg1: i32, %arg2: memref<16x128xf32, #tpu.memory_space<vmem>>, %arg3: memref<16x128xf32, #tpu.memory_space<vmem>>, %arg4: memref<1x8x128xf32, #tpu.memory_space<vmem>>, %arg5: memref<8x128xf32, #tpu.memory_space<vmem>>) attributes {dimension_semantics = [#tpu.dimension_semantics<arbitrary>, #tpu.dimension_semantics<arbitrary>], iteration_bounds = array<i64: 1, 1>, scalar_prefetch = 0 : i64, scratch_operands = 1 : i64, tpu.core_type = #tpu.core_type<tc>, window_params = [{transform_indices = @transform_0, window_bounds = array<i64: 16, 128>}, {transform_indices = @transform_1, window_bounds = array<i64: 16, 128>}, {transform_indices = @transform_2, window_bounds = array<i64: 1, 8, 128>}]} {
    %c0_i32 = arith.constant 0 : i32
    %0 = arith.cmpi eq, %arg1, %c0_i32 : i32
    %1 = arith.extui %0 : i1 to i32
    %c0_i32_0 = arith.constant 0 : i32
    %2 = arith.cmpi ne, %1, %c0_i32_0 : i32
    scf.if %2 {
      %cst_12 = arith.constant 0.000000e+00 : f32
      %23 = vector.broadcast %cst_12 : f32 to vector<8x128xf32>
      %c0_13 = arith.constant 0 : index
      %c0_14 = arith.constant 0 : index
      %24 = vector.load %arg5[%c0_13, %c0_14] : memref<8x128xf32, #tpu.memory_space<vmem>>, vector<8x128xf32>
      tpu.vector_store %arg5[%c0_13, %c0_14], %23 {strides = array<i32>} : memref<8x128xf32, #tpu.memory_space<vmem>>, vector<8x128xf32>,
    } else {
    }
    %c0 = arith.constant 0 : index
    %c0_1 = arith.constant 0 : index
    %3 = vector.load %arg2[%c0, %c0_1] : memref<16x128xf32, #tpu.memory_space<vmem>>, vector<16x128xf32>
    %c0_2 = arith.constant 0 : index
    %c0_3 = arith.constant 0 : index
    %4 = vector.load %arg3[%c0_2, %c0_3] : memref<16x128xf32, #tpu.memory_space<vmem>>, vector<16x128xf32>
    %cst = arith.constant 0.000000e+00 : f32
    %5 = vector.broadcast %cst : f32 to vector<16x128xf32>
    %6 = arith.maximumf %3, %5 : vector<16x128xf32>
    %7 = arith.mulf %3, %4 : vector<16x128xf32>
    %8 = arith.subf %6, %7 : vector<16x128xf32>
    %9 = math.absf %3 : vector<16x128xf32>
    %cst_4 = arith.constant 0.000000e+00 : f32
    %10 = vector.broadcast %cst_4 : f32 to vector<16x128xf32>
    %11 = arith.subf %10, %9 : vector<16x128xf32>
    %12 = math.exp %11 : vector<16x128xf32>
    %13 = math.log1p %12 : vector<16x128xf32>
    %14 = arith.addf %8, %13 : vector<16x128xf32>
    %c0_5 = arith.constant 0 : index
    %c0_6 = arith.constant 0 : index
    %15 = vector.load %arg5[%c0_5, %c0_6] : memref<8x128xf32, #tpu.memory_space<vmem>>, vector<8x128xf32>
    %16 = vector.shape_cast %14 : vector<16x128xf32> to vector<2x8x128xf32>
    %cst_7 = arith.constant dense<0.000000e+00> : vector<8x128xf32>
    %17 = vector.multi_reduction <add>, %16, %cst_7 [0] : vector<2x8x128xf32> to vector<8x128xf32>
    %18 = arith.addf %15, %17 : vector<8x128xf32>
    %c0_8 = arith.constant 0 : index
    %c0_9 = arith.constant 0 : index
    %19 = vector.load %arg5[%c0_8, %c0_9] : memref<8x128xf32, #tpu.memory_space<vmem>>, vector<8x128xf32>
    tpu.vector_store %arg5[%c0_8, %c0_9], %18 {strides = array<i32>} : memref<8x128xf32, #tpu.memory_space<vmem>>, vector<8x128xf32>,
    %c0_i32_10 = arith.constant 0 : i32
    %20 = arith.cmpi eq, %arg1, %c0_i32_10 : i32
    %21 = arith.extui %20 : i1 to i32
    %c0_i32_11 = arith.constant 0 : i32
    %22 = arith.cmpi ne, %21, %c0_i32_11 : i32
    scf.if %22 {
      %c0_12 = arith.constant 0 : index
      %c0_13 = arith.constant 0 : index
      %23 = vector.load %arg5[%c0_12, %c0_13] : memref<8x128xf32, #tpu.memory_space<vmem>>, vector<8x128xf32>
      %24 = vector.shape_cast %23 : vector<8x128xf32> to vector<1x8x128xf32>
      %c0_14 = arith.constant 0 : index
      %c0_15 = arith.constant 0 : index
      %c0_16 = arith.constant 0 : index
      %25 = vector.load %arg4[%c0_14, %c0_15, %c0_16] : memref<1x8x128xf32, #tpu.memory_space<vmem>>, vector<1x8x128xf32>
      tpu.vector_store %arg4[%c0_14, %c0_15, %c0_16], %24 {strides = array<i32>} : memref<1x8x128xf32, #tpu.memory_space<vmem>>, vector<1x8x128xf32>,
    } else {
    }
    return
  }
  func.func @transform_0(%arg0: i32, %arg1: i32) -> (i32, i32) {
    %c1_i32 = arith.constant 1 : i32
    %0 = arith.muli %arg0, %c1_i32 : i32
    %1 = arith.addi %0, %arg1 : i32
    %c0_i32 = arith.constant 0 : i32
    %c0_i32_0 = arith.constant 0 : i32
    return %1, %c0_i32 : i32, i32
  }
  func.func @transform_1(%arg0: i32, %arg1: i32) -> (i32, i32) {
    %c1_i32 = arith.constant 1 : i32
    %0 = arith.muli %arg0, %c1_i32 : i32
    %1 = arith.addi %0, %arg1 : i32
    %c0_i32 = arith.constant 0 : i32
    %c0_i32_0 = arith.constant 0 : i32
    return %1, %c0_i32 : i32, i32
  }
  func.func @transform_2(%arg0: i32, %arg1: i32) -> (i32, i32, i32) {
    %c0_i32 = arith.constant 0 : i32
    %c0_i32_0 = arith.constant 0 : i32
    %c0_i32_1 = arith.constant 0 : i32
    return %arg0, %c0_i32, %c0_i32_0 : i32, i32, i32
  }
}

</mosaic_0001>

<bundles_post_ra>
// kernel: tpu_custom_call.1
= control target key start
LH: loop header
LB: loop body
LE: loop exit
PB: predicated region body
PF: predicated region fallthrough
CT: control target
= control target key end

     0   :  { %7 = vsyncpa [#allocation4], 0  ;;  %s261_s0 = inlined_call_operand.hbm [shape: f32[16,128], index: 0, kind: input, shape index: {}]   ;;  %s262_s1 = inlined_call_operand.hbm [shape: f32[16,128], index: 1, kind: input, shape index: {}]   ;;  %s263_s2 = inlined_call_operand.hbm [shape: f32[1,8,128], index: 2, kind: output, shape index: {}]  }
   0x1   :  { %8 = vsyncpa [#allocation7], 0 }
   0x2   :  { %9 = vsyncpa [#allocation5], 0  ;;  %s205_s9 = smov [#allocation3]   ;;  %s133_s13 = scalar_lea.hbm %s261_s0, 256 }
   0x3   :  { %s19_s10 = sshll.u32 %s205_s9, 4  ;;  %p134_p0 = scmp.ne.s32.totalorder %s261_s0, %s133_s13  ;;  %s20_s10 = int_to_ptr.vmem [resolvable:$true] %s19_s10 }
   0x4   :  { %p137_p1 = scmp.lt.u32.totalorder %s133_s13, %s261_s0 }
   0x6   :  { %p139_p2 = pnand %p137_p1, %p134_p0 }
   0x8   :  { %142 = shalt.err (!%p139_p2)
}
   0x9   :  { %s143_s18 = scalar_lea.vmem %s20_s10, 256  ;;  %p148_p4 = scmp.lt.s32.totalorder %s20_s10, %s20_s10 }
   0xa   :  { %p144_p3 = scmp.ne.s32.totalorder %s20_s10, %s143_s18  ;;  %p149_p5 = scmp.lt.s32.totalorder %s143_s18, %s143_s18 }
   0xc   :  { %p150_p6 = por %p149_p5, %p148_p4 }
   0xe   :  { %p151_p7 = pnand %p150_p6, %p144_p3 }
  0x10   :  { %154 = shalt.err (!%p151_p7)
}
  0x11   :  { %s206_s19 = smov 128   ;;  %s207_s20 = smov 8  }
  0x12   :  { %25 = dma.hbm_to_vmem [thread:$0]  %s261_s0, 256, %s20_s10, [#allocation4], %s206_s19, %s206_s19, %s207_s20  }
  0x13   :  { %s208_s23 = smov [#allocation6]   ;;  %s155_s27 = scalar_lea.hbm %s262_s1, 256 }
  0x14   :  { %s35_s24 = sshll.u32 %s208_s23, 4  ;;  %p156_p8 = scmp.ne.s32.totalorder %s262_s1, %s155_s27  ;;  %s36_s24 = int_to_ptr.vmem [resolvable:$true] %s35_s24 }
  0x15   :  { %p159_p9 = scmp.lt.u32.totalorder %s155_s27, %s262_s1 }
  0x17   :  { %p161_p10 = pnand %p159_p9, %p156_p8 }
  0x19   :  { %164 = shalt.err (!%p161_p10)
}
  0x1a   :  { %s165_s4 = scalar_lea.vmem %s36_s24, 256  ;;  %p170_p12 = scmp.lt.s32.totalorder %s36_s24, %s36_s24 }
  0x1b   :  { %p166_p11 = scmp.ne.s32.totalorder %s36_s24, %s165_s4  ;;  %p171_p13 = scmp.lt.s32.totalorder %s165_s4, %s165_s4 }
  0x1d   :  { %p172_p0 = por %p171_p13, %p170_p12 }
  0x1f   :  { %p173_p1 = pnand %p172_p0, %p166_p11 }
  0x21   :  { %176 = shalt.err (!%p173_p1)
}
  0x22   :  { %41 = dma.hbm_to_vmem [thread:$0]  %s262_s1, 256, %s36_s24, [#allocation7], %s206_s19, %s206_s19, %s207_s20  }
  0x23   :  { %199 = dma.done.wait [#allocation4], 256  }
  0x24   :  { %200 = vsyncadd [#allocation4], 4294967040 }
  0x25   :  { %201 = dma.done.wait [#allocation7], 256  }
  0x26   :  { %202 = vsyncadd [#allocation7], 4294967040  ;;  %v57_v0 = vld [vmem:[#allocation3] sm:$0xff]  ;;  %v58_v1 = vld [vmem:[#allocation3 + $0x8] sm:$0xff]  ;;  %s209_s1 = smov [#allocation8]  }
  0x27   :  { %v67_v2 = vand.u32 2147483647, %v57_v0  ;;  %v68_v3 = vand.u32 2147483647, %v58_v1  ;;  %v59_v14 = vld [vmem:[#allocation6] sm:$0xff]  ;;  %v60_v15 = vld [vmem:[#allocation6 + $0x8] sm:$0xff] }
  0x28   :  { %v61_v17 = vmax.f32 %v57_v0, 0.0  ;;  %v63_v18 = vmul.f32 %v59_v14, %v57_v0  ;;  %v62_v21 = vmax.f32 %v58_v1, 0.0  ;;  %v64_v22 = vmul.f32 %v60_v15, %v58_v1  ;;  %s110_s6 = sshll.u32 %s209_s1, 4  ;;  %s111_s6 = int_to_ptr.vmem [resolvable:$true] %s110_s6 }
  0x29   :  { %v69_v4 = vsub.f32 0.0, %v67_v2  ;;  %v70_v5 = vsub.f32 0.0, %v68_v3  ;;  %s177_s7 = scalar_lea.vmem %s111_s6, 128  ;;  %p182_p3 = scmp.lt.s32.totalorder %s111_s6, %s111_s6 }
  0x2a   :  { %v65_v26 = vsub.f32 %v61_v17, %v63_v18  ;;  %v66_v29 = vsub.f32 %v62_v21, %v64_v22  ;;  %p178_p2 = scmp.ne.s32.totalorder %s111_s6, %s177_s7  ;;  %p183_p4 = scmp.lt.s32.totalorder %s177_s7, %s177_s7 }
  0x2b   :  { %v71_v6 = vmul.f32 1.442695, %v69_v4  ;;  %v73_v7 = vmul.f32 1.442695, %v70_v5 }
  0x2c   :  { %p184_p5 = por %p183_p4, %p182_p3 }
  0x2d   :  { %125 = vpow2.f32 %v71_v6 }
  0x2e   :  { %127 = vpow2.f32 %v73_v7  ;;  %p185_p6 = pnand %p184_p5, %p178_p2 }
  0x37   :  { %v126_v8 = vpop.eup %125 }
  0x38   :  { %v128_v9 = vpop.eup %127  ;;  %v75_v10 = vadd.f32 1.0, %v126_v8  ;;  %v78_v12 = vmul.f32 -0.5, %v126_v8  ;;  %v81_v19 = vand.u32 2147483647, %v126_v8 }
  0x39   :  { %v84_v11 = vadd.f32 1.0, %v128_v9  ;;  %v87_v13 = vmul.f32 -0.5, %v128_v9  ;;  %v90_v23 = vand.u32 2147483647, %v128_v9 }
  0x3a   :  { %129 = vlog2.f32 %v75_v10  ;;  %v79_v16 = vadd.f32 1.0, %v78_v12  ;;  %vm82_vm0 = vcmp.lt.f32.partialorder %v81_v19, 0.0004427343 }
  0x3b   :  { %131 = vlog2.f32 %v84_v11  ;;  %v88_v20 = vadd.f32 1.0, %v87_v13  ;;  %vm91_vm1 = vcmp.lt.f32.partialorder %v90_v23, 0.0004427343 }
  0x3c   :  { %v80_v24 = vmul.f32 %v126_v8, %v79_v16 }
  0x3d   :  { %v89_v27 = vmul.f32 %v128_v9, %v88_v20 }
  0x44   :  { %v130_v25 = vpop.eup %129 }
  0x45   :  { %v132_v28 = vpop.eup %131  ;;  %v77_v30 = vmul.f32 0.6931472, %v130_v25 }
  0x46   :  { %v86_v31 = vmul.f32 0.6931472, %v132_v28 }
  0x47   :  { %v83_v32 = vsel %vm82_vm0, %v80_v24, %v77_v30 }
  0x48   :  { %v92_v33 = vsel %vm91_vm1, %v89_v27, %v86_v31  ;;  %v93_v34 = vadd.f32 %v83_v32, %v65_v26 }
  0x49   :  { %v94_v35 = vadd.f32 %v92_v33, %v66_v29 }
  0x4b   :  { %v96_v36 = vadd.f32 %v94_v35, %v93_v34 }
  0x4d   :  { %103 = vst [vmem:[#allocation8] sm:$0xff] %v96_v36 }
  0x4e   :  { %188 = shalt.err (!%p185_p6)
}
  0x4f   :  { %s189_s10 = scalar_lea.hbm %s263_s2, 128 }
  0x50   :  { %p190_p7 = scmp.ne.s32.totalorder %s263_s2, %s189_s10  ;;  %p193_p8 = scmp.lt.u32.totalorder %s189_s10, %s263_s2 }
  0x52   :  { %p195_p9 = pnand %p193_p8, %p190_p7 }
  0x54   :  { %198 = shalt.err (!%p195_p9)
}
  0x55   :  { %113 = dma.vmem_to_hbm [thread:$0]  %s111_s6, 128, %s263_s2, [#allocation5]  }
  0x56   :  { %203 = dma.done.wait [#allocation5], 128  }
  0x57   :  { %204 = vsyncadd [#allocation5], 4294967168 }
  0x58   :  { %117 = vsyncpa [#allocation4], 1 }
  0x59   :  { %118 = vsyncpa [#allocation7], 1 }
  0x5a   :  { %119 = vsyncpa [#allocation5], 1 }

</bundles_post_ra>
